<compile_context>
chip_gen: v7x
topology: tpu7x:2x2x1
jax: 0.10.0
libtpu: 0.0.40
codegen_flags: <defaults>
</compile_context>

<pallas_src>
import functools

import jax
import jax.numpy as jnp
from jax.experimental import pallas as pl
from jax.experimental.pallas import tpu as pltpu

_LANE = 128


def _round_up(x, m):
    return -(-x // m) * m


def _sublane(dtype):
    # rows per vreg sublane group: 8 for 4-byte, 16 for 2-byte, 32 for 1-byte dtypes.
    return max(8, 32 // jnp.dtype(dtype).itemsize)


def prepare_qknet_params(w1, b1, w2, b2, weight_dtype=None):
    """One-time parameter prep (module init, NOT per forward call).

    PyTorch Linear stores weights as (out_dim, in_dim).  Transpose once, pad each
    half's output dim to a multiple of 128 lanes, and fuse into a single lane-dense
    projection:
        W_fused : (in_dim, 2*out_pad)   (optionally stored in bf16)
        b_fused : (1, 2*out_pad)        (always f32; added post-MXU)
    Padded columns are zero and are never read back (the kernel writes only the
    real out_dim lanes of each half).
    """
    out_dim, in_dim = w1.shape
    weight_dtype = jnp.dtype(weight_dtype or w1.dtype)
    out_pad = _round_up(out_dim, _LANE)

    def half(w, b):
        wt = w.T  # (in_dim, out_dim)
        if out_pad != out_dim:
            wt = jnp.pad(wt, ((0, 0), (0, out_pad - out_dim)))
            b = jnp.pad(b, (0, out_pad - out_dim))
        return wt, b

    w1t, b1p = half(w1, b1)
    w2t, b2p = half(w2, b2)
    w_fused = jnp.concatenate([w1t, w2t], axis=1).astype(weight_dtype)  # (in_dim, 2*out_pad)
    b_fused = jnp.concatenate([b1p, b2p], axis=0).reshape(1, -1).astype(jnp.float32)
    return w_fused, b_fused, out_dim, out_pad


def _vmem_budget_bytes():
    """Generation-aware usable-VMEM budget (~3/4 of physical: 96 MiB v5e/v6e, 48 MiB v7x)."""
    try:
        phys = int(pltpu.get_tpu_info().vmem_capacity_bytes)
    except Exception:
        phys = 64 << 20  # safe floor: v7x per-TensorCore VMEM
    return (phys * 3) // 4


def _qknet_fused_kernel(x_ref, w_ref, b_ref, q_ref, k_ref, *, out_dim, out_pad):
    x = x_ref[...]
    w = w_ref[...]
    if x.dtype != w.dtype:
        x = x.astype(w.dtype)  # e.g. f32 activations against bf16 weights -> bf16 MXU pass
    # Single fused MXU matmul covers both Q and K; f32 accumulation, f32 bias post-MXU.
    y = jnp.dot(x, w, preferred_element_type=jnp.float32) + b_ref[...]
    q_ref[...] = y[:, :out_dim].astype(q_ref.dtype)
    k_ref[...] = y[:, out_pad:out_pad + out_dim].astype(k_ref.dtype)


def qknet_forward(x, w_fused, b_fused, out_dim, out_pad, *, tile_rows=None):
    """x: (N, in_dim); params from prepare_qknet_params. Returns (Q, K), each (N, out_dim)."""
    n, in_dim = x.shape
    fused_pad = w_fused.shape[1]
    assert fused_pad == 2 * out_pad and w_fused.shape[0] == in_dim

    out_dtype = x.dtype
    x_item = jnp.dtype(x.dtype).itemsize
    w_item = jnp.dtype(w_fused.dtype).itemsize
    out_item = jnp.dtype(out_dtype).itemsize
    sub = _sublane(x.dtype)
    w_sub = _sublane(w_fused.dtype)

    # --- corrected VMEM footprint model (lane + sublane padding, real buffer counts) ---
    in_lane = _round_up(in_dim, _LANE)            # x's last dim pads to 128 lanes in VMEM
    out_lane = _round_up(out_dim, _LANE)          # each output block lane-pads to 128
    w_resident = _round_up(in_dim, w_sub) * fused_pad * w_item   # single-buffered (Buffered(1))
    b_resident = 8 * fused_pad * 4                # f32 bias row, 8-sublane padded

    def vmem_bytes(t):
        x_buf = 2 * t * in_lane * x_item          # x tile, double-buffered
        o_buf = 2 * 2 * t * out_lane * out_item   # Q and K tiles, double-buffered
        return x_buf + o_buf + w_resident + b_resident

    budget = _vmem_budget_bytes()
    if tile_rows is not None:
        tile_n = tile_rows
    elif n < sub:
        tile_n = n                                # block == full array dim (allowed)
    else:
        tile_n = min(_round_up(n, sub), 8192)     # big tiles amortize per-grid-step overhead
        if n >= 2048:                             # guarantee >=2 steps so v7x megacore splits
            tile_n = min(tile_n, _round_up(-(-n // 2), sub))
        while tile_n > sub and vmem_bytes(tile_n) > budget:
            tile_n = max(sub, _round_up(tile_n // 2, sub))
        # TODO(synk): if W alone (even single-buffered bf16) approaches the budget for huge
        # in_dim, add a K reduction grid axis ("arbitrary") with an f32 VMEM accumulator
        # instead of shrinking the row tile further.

    vmem_needed = vmem_bytes(max(tile_n, sub))
    vmem_limit = int(min(budget, max(16 << 20, (vmem_needed * 5) // 4)))

    grid = (pl.cdiv(n, tile_n),)  # no jnp.pad: Pallas masks the ragged edge block
    kernel = functools.partial(_qknet_fused_kernel, out_dim=out_dim, out_pad=out_pad)

    q, k = pl.pallas_call(
        kernel,
        out_shape=(
            jax.ShapeDtypeStruct((n, out_dim), out_dtype),
            jax.ShapeDtypeStruct((n, out_dim), out_dtype),
        ),
        grid_spec=pltpu.PrefetchScalarGridSpec(
            num_scalar_prefetch=0,
            grid=grid,
            in_specs=[
                pl.BlockSpec((tile_n, in_dim), lambda i: (i, 0)),          # x row tile (2-buffered)
                pl.BlockSpec((in_dim, fused_pad), lambda i: (0, 0),
                             pipeline_mode=pl.Buffered(1)),                # resident W, 1 buffer
                pl.BlockSpec((1, fused_pad), lambda i: (0, 0),
                             pipeline_mode=pl.Buffered(1)),                # resident bias, 1 buffer
            ],
            out_specs=[
                pl.BlockSpec((tile_n, out_dim), lambda i: (i, 0)),         # Q
                pl.BlockSpec((tile_n, out_dim), lambda i: (i, 0)),         # K
            ],
        ),
        compiler_params=pltpu.CompilerParams(
            dimension_semantics=("parallel",),  # shard N across v7x's 2 TCs; no-op on v5e/v6e
            vmem_limit_bytes=vmem_limit,
        ),
    )(x, w_fused, b_fused)
    return q, k


if __name__ == "__main__":
    key = jax.random.PRNGKey(0)
    k_x, k_w1, k_b1, k_w2, k_b2 = jax.random.split(key, 5)

    # Small shapes consistent with the module; N not a multiple of the forced tile
    # exercises the ragged-edge (no-pad) path.
    N, in_dim, out_dim = 20, 32, 16

    x = jax.random.normal(k_x, (N, in_dim), dtype=jnp.float32)
    bound = 1.0 / (in_dim ** 0.5)  # PyTorch nn.Linear default init range
    w1 = jax.random.uniform(k_w1, (out_dim, in_dim), minval=-bound, maxval=bound)
    b1 = jax.random.uniform(k_b1, (out_dim,), minval=-bound, maxval=bound)
    w2 = jax.random.uniform(k_w2, (out_dim, in_dim), minval=-bound, maxval=bound)
    b2 = jax.random.uniform(k_b2, (out_dim,), minval=-bound, maxval=bound)

    # Plain-JAX reference.
    q_ref = x @ w1.T + b1
    k_ref = x @ w2.T + b2

    # --- f32 path, forced small tile -> multi-step ragged grid (3 steps over 20 rows) ---
    w_f, b_f, od, op = prepare_qknet_params(w1, b1, w2, b2)
    q, k = qknet_forward(x, w_f, b_f, od, op, tile_rows=8)
    jax.block_until_ready((q, k))
    assert q.shape == q_ref.shape and k.shape == k_ref.shape
    assert jnp.allclose(q, q_ref, atol=1e-5), "Q mismatch (f32, tiled)"
    assert jnp.allclose(k, k_ref, atol=1e-5), "K mismatch (f32, tiled)"

    # --- f32 path, automatic tile selection ---
    q2, k2 = qknet_forward(x, w_f, b_f, od, op)
    jax.block_until_ready((q2, k2))
    assert jnp.allclose(q2, q_ref, atol=1e-5), "Q mismatch (f32, auto tile)"
    assert jnp.allclose(k2, k_ref, atol=1e-5), "K mismatch (f32, auto tile)"

    # --- bf16 storage path (perf recommendation): bf16 weights/inputs, f32 acc + f32 bias ---
    w_bf, b_bf, od, op = prepare_qknet_params(w1, b1, w2, b2, weight_dtype=jnp.bfloat16)
    q3, k3 = qknet_forward(x.astype(jnp.bfloat16), w_bf, b_bf, od, op)
    jax.block_until_ready((q3, k3))
    assert jnp.allclose(q3.astype(jnp.float32), q_ref, atol=5e-2, rtol=5e-2), "Q mismatch (bf16)"
    assert jnp.allclose(k3.astype(jnp.float32), k_ref, atol=5e-2, rtol=5e-2), "K mismatch (bf16)"

    print("KERNEL_OK")
</pallas_src>

<mosaic_0001>
module attributes {stable_mosaic.version = 11 : i64} {
  func.func @_qknet_fused_kernel(%arg0: i32, %arg1: memref<8x32xf32, #tpu.memory_space<vmem>>, %arg2: memref<32x256xf32, #tpu.memory_space<vmem>>, %arg3: memref<1x256xf32, #tpu.memory_space<vmem>>, %arg4: memref<8x16xf32, #tpu.memory_space<vmem>>, %arg5: memref<8x16xf32, #tpu.memory_space<vmem>>) attributes {dimension_semantics = [#tpu.dimension_semantics<parallel>], iteration_bounds = array<i64: 3>, scalar_prefetch = 0 : i64, scratch_operands = 0 : i64, tpu.core_type = #tpu.core_type<tc>, window_params = [{transform_indices = @transform_0, window_bounds = array<i64: 8, 32>}, {pipeline_mode = #tpu.pipeline_mode<synchronous>, transform_indices = @transform_1, window_bounds = array<i64: 32, 256>}, {pipeline_mode = #tpu.pipeline_mode<synchronous>, transform_indices = @transform_2, window_bounds = array<i64: 1, 256>}, {transform_indices = @transform_3, window_bounds = array<i64: 8, 16>}, {transform_indices = @transform_4, window_bounds = array<i64: 8, 16>}]} {
    %c0 = arith.constant 0 : index
    %c0_0 = arith.constant 0 : index
    %0 = vector.load %arg1[%c0, %c0_0] : memref<8x32xf32, #tpu.memory_space<vmem>>, vector<8x32xf32>
    %c0_1 = arith.constant 0 : index
    %c0_2 = arith.constant 0 : index
    %1 = vector.load %arg2[%c0_1, %c0_2] : memref<32x256xf32, #tpu.memory_space<vmem>>, vector<32x256xf32>
    %cst = arith.constant dense<0.000000e+00> : vector<8x256xf32>
    %2 = tpu.matmul %0, %1, %cst {dimension_numbers = #tpu.dot_dimension_numbers<[1], [0], [0], [1], [0, 0, 1, 1], [], []>} : vector<8x32xf32>, vector<32x256xf32>, vector<8x256xf32> -> vector<8x256xf32>
    %c0_3 = arith.constant 0 : index
    %c0_4 = arith.constant 0 : index
    %3 = vector.load %arg3[%c0_3, %c0_4] : memref<1x256xf32, #tpu.memory_space<vmem>>, vector<1x256xf32>
    %4 = vector.broadcast %3 : vector<1x256xf32> to vector<8x256xf32>
    %5 = arith.addf %2, %4 : vector<8x256xf32>
    %6 = vector.extract_strided_slice %5 {offsets = [0, 0], sizes = [8, 16], strides = [1, 1]} : vector<8x256xf32> to vector<8x16xf32>
    %c0_5 = arith.constant 0 : index
    %c0_6 = arith.constant 0 : index
    %7 = vector.load %arg4[%c0_5, %c0_6] : memref<8x16xf32, #tpu.memory_space<vmem>>, vector<8x16xf32>
    tpu.vector_store %arg4[%c0_5, %c0_6], %6 {strides = array<i32>} : memref<8x16xf32, #tpu.memory_space<vmem>>, vector<8x16xf32>,
    %8 = vector.extract_strided_slice %5 {offsets = [0, 128], sizes = [8, 16], strides = [1, 1]} : vector<8x256xf32> to vector<8x16xf32>
    %c0_7 = arith.constant 0 : index
    %c0_8 = arith.constant 0 : index
    %9 = vector.load %arg5[%c0_7, %c0_8] : memref<8x16xf32, #tpu.memory_space<vmem>>, vector<8x16xf32>
    tpu.vector_store %arg5[%c0_7, %c0_8], %8 {strides = array<i32>} : memref<8x16xf32, #tpu.memory_space<vmem>>, vector<8x16xf32>,
    return
  }
  func.func @transform_0(%arg0: i32) -> (i32, i32) {
    %c0_i32 = arith.constant 0 : i32
    %c0_i32_0 = arith.constant 0 : i32
    return %arg0, %c0_i32 : i32, i32
  }
  func.func @transform_1(%arg0: i32) -> (i32, i32) {
    %c0_i32 = arith.constant 0 : i32
    %c0_i32_0 = arith.constant 0 : i32
    %c0_i32_1 = arith.constant 0 : i32
    return %c0_i32, %c0_i32_0 : i32, i32
  }
  func.func @transform_2(%arg0: i32) -> (i32, i32) {
    %c0_i32 = arith.constant 0 : i32
    %c0_i32_0 = arith.constant 0 : i32
    %c0_i32_1 = arith.constant 0 : i32
    return %c0_i32, %c0_i32_0 : i32, i32
  }
  func.func @transform_3(%arg0: i32) -> (i32, i32) {
    %c0_i32 = arith.constant 0 : i32
    %c0_i32_0 = arith.constant 0 : i32
    return %arg0, %c0_i32 : i32, i32
  }
  func.func @transform_4(%arg0: i32) -> (i32, i32) {
    %c0_i32 = arith.constant 0 : i32
    %c0_i32_0 = arith.constant 0 : i32
    return %arg0, %c0_i32 : i32, i32
  }
}

</mosaic_0001>

<bundles_post_ra>
// kernel: tpu_custom_call.1
= control target key start
LH: loop header
LB: loop body
LE: loop exit
PB: predicated region body
PF: predicated region fallthrough
CT: control target
= control target key end

     0   :  { %10 = vsyncpa [#allocation3], 0  ;;  %s792_s0 = inlined_call_operand.hbm [shape: f32[20,32], index: 0, kind: input, shape index: {}]   ;;  %s793_s1 = inlined_call_operand.hbm [shape: f32[32,256], index: 1, kind: input, shape index: {}]   ;;  %s794_s2 = inlined_call_operand.vmem [shape: f32[1,256], index: 2, kind: input, shape index: {}]   ;;  %s795_s3 = inlined_call_operand.vmem [shape: f32[20,16], index: 3, kind: output, shape index: {0}]   ;;  %s796_s4 = inlined_call_operand.vmem [shape: f32[20,16], index: 4, kind: output, shape index: {1}]  }
   0x1   :  { %12 = vsyncpa [#allocation3 + $0x1], 0 }
   0x2   :  { %13 = vsyncpa [#allocation5], 0  ;;  %s647_s15 = smov 0   ;;  %s649_s16 = smov 0  }
   0x3   :  { %s651_s17 = smov 0   ;;  %s653_s18 = smov 0  }
   0x4 LB: > { %s666_s19 = sadd.s32 4294967295, %s615_s18   ;;  %p39_p0 = scmp.ne.s32.totalorder %s607_s16, %s603_s15  ;;  %s615_s18 = sphi %s653_s18, %s811_s18   ;;  %s611_s17 = sphi %s651_s17, %s810_s17   ;;  %s607_s16 = sphi %s649_s16, %s809_s16   ;;  %s603_s15 = sphi %s647_s15, %s808_s15  }
   0x5   : > { %p797_p1 = scmp.eq.s32.totalorder %s666_s19, 0  ;;  %p445_p2 = scmp.ge.s32.totalorder %s615_s18, 1 }
   0x6   : > { %p144_p3 = scmp.lt.s32.totalorder %s615_s18, 4  ;;  %s617_s22 = smov [#allocation4]  }
   0x7   : > { %p674_p4 = por %p797_p1, %p39_p0  ;;  %s156_s23 = sshll.u32 %s617_s22, 4  ;;  %s157_s23 = int_to_ptr.vmem [resolvable:$true] %s156_s23 }
   0x8   : > { %p678_p5 = pnand %p445_p2, %p144_p3  ;;  %s691_s25 = sadd.s32 1, %s615_s18  }
   0x9   : > { %s800_s20 = scalar_select %p674_p4, 1, 0 }
   0xa   : > { %s801_s21 = scalar_select %p678_p5, 1, 0 }
   0xb   : > { %p472_p6 = pneg %p678_p5  ;;  %s26_s26 = sadd.s32 1, %s611_s17 }
   0xc   : > { %s23_s27 = ssub.s32 %s615_s18, %s691_s25  ;;  %s519_s30 = scalar_lea.hbm %s793_s1, 1024 }
   0xd   : > { %p686_p7 = pnand %p472_p6, %p797_p1  ;;  %p520_p8 = scmp.ne.s32.totalorder %s793_s1, %s519_s30 }
   0xe   : > { %p526_p12 = scmp.lt.u32.totalorder %s519_s30, %s793_s1 }
   0xf   : > { %p521_p9 = pneg %p686_p7 }
  0x11   : > { %p522_p10 = pnand %p521_p9, %p520_p8 }
  0x13   : > { %p523_p11 = pneg %p522_p10 }
  0x15   : > { %p528_p13 = pnand %p526_p12, %p523_p11 }
  0x17   : > { %531 = shalt.err (!%p528_p13)
}
  0x18   : > { %s532_s9 = scalar_lea.vmem %s157_s23, 1024  ;;  %p540_p6 = scmp.lt.s32.totalorder %s157_s23, %s157_s23 }
  0x19   : > { %p533_p0 = scmp.ne.s32.totalorder %s157_s23, %s532_s9  ;;  %p541_p1 = scmp.lt.s32.totalorder %s532_s9, %s532_s9 }
  0x1b   : > { %p535_p2 = pnand %p533_p0, %p521_p9  ;;  %p542_p4 = por %p541_p1, %p540_p6 }
  0x1d   : > { %p536_p3 = pneg %p535_p2 }
  0x1f   : > { %p543_p5 = pnand %p542_p4, %p536_p3 }
  0x21   : > { %546 = shalt.err (!%p543_p5)
}
  0x22   : > { %s618_s10 = smov 256   ;;  %s619_s11 = smov 16  }
  0x23   : > { %475 = dma.hbm_to_vmem [thread:$0]  (!%p686_p7), %s793_s1, 1024, %s157_s23, [#allocation5], %s618_s10, %s618_s10, %s619_s11  }
  0x24   : > { %p24_p8 = scmp.eq.s32.totalorder %s23_s27, 0  ;;  %p33_p9 = scmp.ne.s32.totalorder %s611_s17, %s607_s16 }
  0x25   : > { %p34_p1 = scmp.eq.s32.totalorder %s615_s18, 0  ;;  %p481_p4 = scmp.lt.s32.totalorder %s615_s18, 3 }
  0x26   : > { %s717_s14 = scalar_select %p24_p8, %s611_s17, %s26_s26  }
  0x27   : > { %p35_p5 = por %p34_p1, %p33_p9  ;;  %s173_s15 = sand.u32 1, %s611_s17  }
  0x28   : > { %s448_s22 = sshll.u32 %s173_s15, 3  ;;  %s449_s28 = sshll.u32 %s615_s18, 7 }
  0x29   : > { %s724_s5 = scalar_lea.hbm %s792_s0, %s449_s28  ;;  %s177_s23 = scalar_lea.vmem [#allocation2], %s448_s22 }
  0x2a   : > { %s184_s24 = sshll.u32 %s177_s23, 4  ;;  %p728_p7 = pnand %p481_p4, %p35_p5  ;;  %s726_s24 = int_to_ptr.vmem [resolvable:$true] %s184_s24 }
  0x2b   : > { %s174_s18 = scalar_lea.sflag [#allocation3], %s173_s15  ;;  %s547_s27 = scalar_lea.hbm %s724_s5, 128 }
  0x2c   : > { %p548_p10 = scmp.ne.s32.totalorder %s724_s5, %s547_s27  ;;  %p549_p11 = pneg %p728_p7 }
  0x2d   : > { %s552_s8 = scalar_lea.hbm %s792_s0, 384  ;;  %p553_p0 = scmp.lt.u32.totalorder %s724_s5, %s792_s0 }
  0x2e   : > { %p550_p12 = pnand %p549_p11, %p548_p10  ;;  %p554_p2 = scmp.lt.u32.totalorder %s552_s8, %s547_s27 }
  0x2f   : > { %p556_p6 = scmp.lt.u32.totalorder %s547_s27, %s724_s5 }
  0x30   : > { %p551_p13 = pneg %p550_p12  ;;  %p555_p3 = por %p554_p2, %p553_p0 }
  0x32   : > { %p557_p8 = por %p556_p6, %p555_p3 }
  0x34   : > { %p558_p9 = pnand %p557_p8, %p551_p13 }
  0x36   : > { %561 = shalt.err (!%p558_p9)
}
  0x37   : > { %s562_s11 = scalar_lea.vmem %s726_s24, 128  ;;  %s620_s12 = smov [#allocation2]  }
  0x38   : > { %p563_p1 = scmp.ne.s32.totalorder %s726_s24, %s562_s11  ;;  %s567_s13 = sshll.u32 %s620_s12, 4  ;;  %s568_s13 = int_to_ptr.vmem [resolvable:$false] %s567_s13 }
  0x39   : > { %s569_s15 = scalar_lea.vmem %s568_s13, 256  ;;  %p570_p10 = scmp.lt.s32.totalorder %s726_s24, %s568_s13 }
  0x3a   : > { %p565_p4 = pnand %p563_p1, %p549_p11  ;;  %p571_p12 = scmp.lt.s32.totalorder %s569_s15, %s562_s11 }
  0x3c   : > { %p566_p5 = pneg %p565_p4  ;;  %p572_p0 = por %p571_p12, %p570_p10 }
  0x3e   : > { %p573_p2 = pnand %p572_p0, %p566_p5 }
  0x40   : > { %576 = shalt.err (!%p573_p2)
}
  0x41   : > { %479 = dma.hbm_to_vmem [thread:$0]  (!%p728_p7), %s724_s5, 128, %s726_s24, %s174_s18  }
  0x42   : > { %p804_p13 = scmp.ne.s32.totalorder %s801_s21, 0 }
  0x43   : > { %s195_s22 = sand.u32 (!%p804_p13), 1, %s607_s16   ;;  %p805_p11 = scmp.ne.s32.totalorder (!%p804_p13), %s800_s20, 0 }
  0x44   : > { %193 = sbr.rel (%p804_p13) target bundleno = 306 (0x132), region = 32  ;;  %s451_s28 = sshll.u32 (!%p804_p13), %s195_s22, 3 }
  0x45   : > { %s196_s29 = scalar_lea.sflag (!%p804_p13), [#allocation3], %s195_s22  ;;  %s199_s30 = scalar_lea.vmem (!%p804_p13), [#allocation2], %s451_s28 }
  0x4b   : > { %594 = dma.done.wait (%p805_p11), %s196_s29, 128  }
  0x4c   : > { %596 = vsyncadd (%p805_p11), %s196_s29, 4294967168  ;;  %p806_p3 = scmp.eq.s32.totalorder %s666_s19, 0 }
  0x4e   : > { %598 = dma.done.wait (%p806_p3), [#allocation5], 1024   ;;  %p807_p6 = pmov %p806_p3 }
  0x4f   : > { %v621_v0 = vmov 0.0   ;;  %v241_v1 = vld [vmem:[#allocation4 + $0x8] sm:$0xff]  ;;  %v243_v2 = vld [vmem:[#allocation4 + $0x18] sm:$0xff]  ;;  %v240_v3 = vld [vmem:[#allocation4] sm:$0xff]  ;;  %vm260_vm0 = vcmask 261120   ;;  %v250_v14 = vlaneseq  ;;  %p231_p7 = scmp.lt.s32.totalorder %s666_s19, 2 }
  0x50   : > { %600 = vsyncadd (%p807_p6), [#allocation5], 4294966272  ;;  %328 = vmatprep.mubr.f32.mxu0 %v621_v0  ;;  %v458_v4 = vpack.c.bf16 %v243_v2, %v241_v1  ;;  %v242_v5 = vld [vmem:[#allocation4 + $0x10] sm:$0xff]  ;;  %v245_v6 = vld [vmem:[#allocation4 + $0x28] sm:$0xff]  ;;  %vm335_vm1 = vcmask 130048  }
  0x51   : > { %v247_v7 = vld [vmem:[#allocation4 + $0x38] sm:$0xff]  ;;  %v460_v8 = vpack.c.bf16 %v242_v5, %v240_v3  ;;  %v244_v10 = vld [vmem:[#allocation4 + $0x20] sm:$0xff]  ;;  %v246_v11 = vld [vmem:[#allocation4 + $0x30] sm:$0xff]  ;;  %v251_v15 = vshrl.u32 %v250_v14, 7  ;;  %s813_s19 = smov (!%p231_p7, %s666_s19), 2 }
  0x52   : > { %v462_v9 = vpack.c.bf16 %v247_v7, %v245_v6  ;;  %459 = vmatprep.subr.bf16.mxu0 %v458_v4  ;;  %v464_v12 = vpack.c.bf16 %v246_v11, %v244_v10  ;;  %v239_v13 = vld [vmem:[%s199_s30] sm:$0xff]  ;;  %v248_v17 = vld [vmem:[%s794_s2] sm:$0x3]  ;;  %s453_s5 = sshll.u32 %s813_s19, 3 }
  0x53   : > { %461 = vmatpush1.bf16.msra.mxu0 %v460_v8  ;;  %v252_v16 = vsub.s32 0, %v251_v15  ;;  %v256_v18 = vsub.s32 1, %v251_v15  ;;  %s234_s26 = scalar_lea.vmem %s795_s3, %s453_s5  ;;  %s238_s6 = scalar_lea.vmem %s796_s4, %s453_s5 }
  0x54   : > { %463 = vmatprep.subr.bf16.mxu0 %v462_v9 }
  0x55   : > { %v253_v19 = vrot.slane %v248_v17, %v252_v16  ;;  %v257_v20 = vrot.slane %v248_v17, %v256_v18 }
  0x57   : > { %465 = vmatpush1.bf16.msra.mxu0 %v464_v12 }
  0x5a   : > { %455 = vmatmul.mubr.msk.f32.vlgmr.msra.gmra.mrb[0].mxu0 %vm260_vm0, %v239_v13 }
 0x12d   : > { %v330_v21 = vpop.f32.mrb[0].mxu0 }
 0x12e   : > { %v331_v22 = vadd.f32 %v330_v21, %v253_v19  ;;  %v332_v23 = vpop.f32.mrb[1].mxu0 }
 0x12f   : > { %v333_v24 = vadd.f32 %v332_v23, %v257_v20 }
 0x130   : > { %336 = vst.msk [vmem:[%s234_s26] sm:$0xff] %vm335_vm1, %v331_v22 }
 0x131   : > { %337 = vst.msk [vmem:[%s238_s6] sm:$0xff] %vm335_vm1, %v333_v24 }
 0x132 PF: > { %p16_p8 = scmp.ge.s32.totalorder %s691_s25, 5   ;;  %s808_s15 = smov %s607_s16 }
 0x133   : > { %s809_s16 = smov %s611_s17  ;;  %s810_s17 = smov %s717_s14 }
 0x134   : > { %s811_s18 = smov %s691_s25  ;;  %18 = sbr.rel (!%p16_p8) target bundleno = 4 (0x4), region = 88 }
 0x13b   :  { %371 = vsyncpa [#allocation3], 1 }
 0x13c   :  { %373 = vsyncpa [#allocation3 + $0x1], 1 }
 0x13d   :  { %374 = vsyncpa [#allocation5], 1 }

</bundles_post_ra>
